<compile_context>
chip_gen: v6e
topology: v6e:2x2x1
jax: 0.10.0
libtpu: 0.0.40
codegen_flags: <defaults>
</compile_context>

<pallas_src>
import functools
import math

import jax
import jax.numpy as jnp
from jax.experimental import pallas as pl
from jax.experimental.pallas import tpu as pltpu

IGNORE_LB = 255


def _ce_kernel(logits_ref, labels_ref, loss_ref, parts_ref, *, hw, thresh_val):
    # logits_ref: (C, TP) f32/bf16, labels_ref: (1, TP) int32
    # loss_ref:   (1, TP) f32
    # parts_ref:  (1, 128) f32  -- lane0: valid count, lane1: count(loss>thresh),
    #                             lane2: sum(loss where > thresh)
    i = pl.program_id(1)
    tile_p = labels_ref.shape[-1]

    logits = logits_ref[...].astype(jnp.float32)                 # (C, TP)
    labels = labels_ref[...]                                     # (1, TP)

    # Numerically stable CE; the max cancels:
    #   loss = log(sum exp(x - m)) - (x[target] - m)
    m = jnp.max(logits, axis=0, keepdims=True)                   # (1, TP)
    shifted = logits - m                                         # (C, TP) reused
    sumexp = jnp.sum(jnp.exp(shifted), axis=0, keepdims=True)    # (1, TP)
    cls_ids = jax.lax.broadcasted_iota(jnp.int32, shifted.shape, 0)
    picked = jnp.sum(jnp.where(cls_ids == labels, shifted, 0.0),
                     axis=0, keepdims=True)                      # (1, TP)
    loss_raw = jnp.log(sumexp) - picked                          # (1, TP)

    # Mask the ragged tail (lanes past HW in the last tile) and ignored labels.
    lane = jax.lax.broadcasted_iota(jnp.int32, (1, tile_p), 1)
    in_range = (i * tile_p + lane) < hw
    keep = jnp.logical_and(in_range, labels != IGNORE_LB)

    loss = jnp.where(keep, loss_raw, 0.0)
    loss_ref[...] = loss

    # Fused branch-A / validity partial reductions (exact per-tile integers).
    above = jnp.logical_and(keep, loss_raw > thresh_val)
    vcnt = jnp.sum(keep.astype(jnp.float32), keepdims=True)      # (1, 1)
    acnt = jnp.sum(above.astype(jnp.float32), keepdims=True)     # (1, 1)
    asum = jnp.sum(jnp.where(above, loss_raw, 0.0), keepdims=True)

    lane128 = jax.lax.broadcasted_iota(jnp.int32, (1, 128), 1)
    parts_ref[...] = jnp.where(
        lane128 == 0, vcnt,
        jnp.where(lane128 == 1, acnt,
                  jnp.where(lane128 == 2, asum, 0.0)))


def _round_up(x, m):
    return ((x + m - 1) // m) * m


def _choose_tile_p(hw, c, itemsize, max_tile=32768,
                   vmem_block_budget=20 * 1024 * 1024):
    """Largest 128-multiple pixel tile keeping double-buffered logits blocks +
    in-kernel (C, tile_p) f32 temporaries under a conservative VMEM budget
    (safe on v7x's 64 MiB VMEM as well as v5e/v6e)."""
    per_pix = c * itemsize * 2 + c * 4 * 2 + 8 * 4   # 2 bufs + shifted/exp + rows
    cap = max(128, (vmem_block_budget // per_pix) // 128 * 128)
    return min(max_tile, cap, _round_up(hw, 128))


def per_pixel_ce_and_partials(logits_nc_hw, labels_n1_hw, thresh_val, *,
                              max_tile=32768):
    """logits: (N, C, HW) f32/bf16, labels: (N, 1, HW) int32.

    Returns (loss (N,1,HW) f32, partials (N,1,num_tiles*128) f32)."""
    N, C, HW = logits_nc_hw.shape
    tile_p = _choose_tile_p(HW, C, logits_nc_hw.dtype.itemsize, max_tile)
    num_tiles = pl.cdiv(HW, tile_p)

    kernel = functools.partial(_ce_kernel, hw=HW, thresh_val=thresh_val)

    loss, parts = pl.pallas_call(
        kernel,
        out_shape=(
            jax.ShapeDtypeStruct((N, 1, HW), jnp.float32),
            jax.ShapeDtypeStruct((N, 1, num_tiles * 128), jnp.float32),
        ),
        grid_spec=pltpu.PrefetchScalarGridSpec(
            num_scalar_prefetch=0,
            grid=(N, num_tiles),
            in_specs=[
                # None == squeezed batch dim: kernel sees (C, tile_p).
                pl.BlockSpec((None, C, tile_p), lambda n, i: (n, 0, i)),
                pl.BlockSpec((None, 1, tile_p), lambda n, i: (n, 0, i)),
            ],
            out_specs=[
                pl.BlockSpec((None, 1, tile_p), lambda n, i: (n, 0, i)),
                pl.BlockSpec((None, 1, 128), lambda n, i: (n, 0, i)),
            ],
        ),
        compiler_params=pltpu.CompilerParams(
            dimension_semantics=("parallel", "parallel"),
            vmem_limit_bytes=48 * 1024 * 1024,
        ),
    )(logits_nc_hw, labels_n1_hw)
    return loss, parts


@functools.partial(jax.jit, static_argnames=("thresh",))
def ohem_ce_loss(logits, labels, *, thresh=0.7):
    """logits: (N, C, H, W) float (f32 or bf16), labels: (N, H, W) int.

    Matches PyTorch OhemCELoss.forward: per-pixel CE with ignore_index=255;
    if the n_min-th largest loss exceeds -log(thresh), average all losses above
    the threshold, else average the top n_min losses.
    """
    N, C, H, W = logits.shape
    HW = H * W
    P = N * HW
    thresh_val = float(-math.log(thresh))

    # Pure views of the original layout -- no transpose, no extra HBM traffic.
    logits_r = logits.reshape(N, C, HW)
    labels_r = labels.astype(jnp.int32).reshape(N, 1, HW)

    loss, parts = per_pixel_ce_and_partials(logits_r, labels_r, thresh_val)
    loss_flat = loss.reshape(P)

    # Tiny (grid-sized) reduction of the in-kernel partials. Per-tile counts are
    # exact integer-valued floats (<= tile_p); sum them in int32 for exactness.
    parts = parts.reshape(-1, 128)
    valid_cnt = jnp.sum(parts[:, 0].astype(jnp.int32))
    above_cnt = jnp.sum(parts[:, 1].astype(jnp.int32))
    above_sum = jnp.sum(parts[:, 2])

    n_min = valid_cnt // 16

    # loss_sorted[n_min] > thresh  <=>  count(loss > thresh) > n_min  (strict).
    def branch_above(_):
        return above_sum / jnp.maximum(above_cnt.astype(jnp.float32), 1.0)

    def branch_topk(loss_vec):
        # Only runs when branch B is taken; bounded top_k replaces full sort.
        k_max = P // 16 + 1
        topk_vals, _ = jax.lax.top_k(loss_vec, k_max)            # descending
        mask = jnp.arange(k_max) < n_min
        return jnp.sum(jnp.where(mask, topk_vals, 0.0)) / jnp.maximum(
            n_min.astype(jnp.float32), 1.0)

    return jax.lax.cond(above_cnt > n_min, branch_above, branch_topk, loss_flat)


if __name__ == "__main__":
    key = jax.random.PRNGKey(0)
    k_logits, k_labels, k_ign = jax.random.split(key, 3)

    N, C, H, W = 2, 4, 16, 16
    logits = jax.random.normal(k_logits, (N, C, H, W), dtype=jnp.float32)
    labels = jax.random.randint(k_labels, (N, H, W), 0, C, dtype=jnp.int32)
    # sprinkle some ignore pixels (label 255)
    ign_mask = jax.random.uniform(k_ign, (N, H, W)) < 0.1
    labels = jnp.where(ign_mask, IGNORE_LB, labels)

    out = ohem_ce_loss(logits, labels, thresh=0.7)
    jax.block_until_ready(out)
    print("KERNEL_OK")
</pallas_src>

<mosaic_0001>
module attributes {stable_mosaic.version = 11 : i64} {
  func.func @_ce_kernel(%arg0: i32, %arg1: i32, %arg2: memref<1x4x256xf32, #tpu.memory_space<vmem>>, %arg3: memref<1x1x256xi32, #tpu.memory_space<vmem>>, %arg4: memref<1x1x256xf32, #tpu.memory_space<vmem>>, %arg5: memref<1x1x128xf32, #tpu.memory_space<vmem>>) attributes {dimension_semantics = [#tpu.dimension_semantics<parallel>, #tpu.dimension_semantics<parallel>], iteration_bounds = array<i64: 2, 1>, scalar_prefetch = 0 : i64, scratch_operands = 0 : i64, tpu.core_type = #tpu.core_type<tc>, window_params = [{transform_indices = @transform_0, window_bounds = array<i64: 1, 4, 256>}, {transform_indices = @transform_1, window_bounds = array<i64: 1, 1, 256>}, {transform_indices = @transform_2, window_bounds = array<i64: 1, 1, 256>}, {transform_indices = @transform_3, window_bounds = array<i64: 1, 1, 128>}]} {
    %c0 = arith.constant 0 : index
    %c0_0 = arith.constant 0 : index
    %c0_1 = arith.constant 0 : index
    %0 = vector.load %arg2[%c0, %c0_0, %c0_1] : memref<1x4x256xf32, #tpu.memory_space<vmem>>, vector<1x4x256xf32>
    %1 = vector.shape_cast %0 : vector<1x4x256xf32> to vector<4x256xf32>
    %c0_2 = arith.constant 0 : index
    %c0_3 = arith.constant 0 : index
    %c0_4 = arith.constant 0 : index
    %2 = vector.load %arg3[%c0_2, %c0_3, %c0_4] : memref<1x1x256xi32, #tpu.memory_space<vmem>>, vector<1x1x256xi32>
    %3 = vector.shape_cast %2 : vector<1x1x256xi32> to vector<1x256xi32>
    %cst = arith.constant dense<0xFF800000> : vector<256xf32>
    %4 = vector.multi_reduction <maximumf>, %1, %cst [0] : vector<4x256xf32> to vector<256xf32>
    %5 = vector.shape_cast %4 : vector<256xf32> to vector<1x256xf32>
    %6 = vector.broadcast %5 : vector<1x256xf32> to vector<4x256xf32>
    %7 = arith.subf %1, %6 : vector<4x256xf32>
    %8 = math.exp %7 : vector<4x256xf32>
    %cst_5 = arith.constant dense<0.000000e+00> : vector<256xf32>
    %9 = vector.multi_reduction <add>, %8, %cst_5 [0] : vector<4x256xf32> to vector<256xf32>
    %10 = vector.shape_cast %9 : vector<256xf32> to vector<1x256xf32>
    %11 = tpu.iota {dimensions = array<i32: 0>} : vector<4x256xi32>
    %12 = vector.broadcast %3 : vector<1x256xi32> to vector<4x256xi32>
    %13 = arith.cmpi eq, %11, %12 : vector<4x256xi32>
    %cst_6 = arith.constant 0.000000e+00 : f32
    %14 = vector.broadcast %cst_6 : f32 to vector<4x256xf32>
    %15 = arith.select %13, %7, %14 : vector<4x256xi1>, vector<4x256xf32>
    %cst_7 = arith.constant dense<0.000000e+00> : vector<256xf32>
    %16 = vector.multi_reduction <add>, %15, %cst_7 [0] : vector<4x256xf32> to vector<256xf32>
    %17 = vector.shape_cast %16 : vector<256xf32> to vector<1x256xf32>
    %18 = math.log %10 : vector<1x256xf32>
    %19 = arith.subf %18, %17 : vector<1x256xf32>
    %20 = tpu.iota {dimensions = array<i32: 1>} : vector<1x256xi32>
    %c256_i32 = arith.constant 256 : i32
    %21 = arith.muli %arg1, %c256_i32 : i32
    %22 = vector.broadcast %21 : i32 to vector<1x256xi32>
    %23 = arith.addi %22, %20 : vector<1x256xi32>
    %c256_i32_8 = arith.constant 256 : i32
    %24 = vector.broadcast %c256_i32_8 : i32 to vector<1x256xi32>
    %25 = arith.cmpi slt, %23, %24 : vector<1x256xi32>
    %c255_i32 = arith.constant 255 : i32
    %26 = vector.broadcast %c255_i32 : i32 to vector<1x256xi32>
    %27 = arith.cmpi ne, %3, %26 : vector<1x256xi32>
    %28 = arith.andi %25, %27 : vector<1x256xi1>
    %cst_9 = arith.constant 0.000000e+00 : f32
    %29 = vector.broadcast %cst_9 : f32 to vector<1x256xf32>
    %30 = arith.select %28, %19, %29 : vector<1x256xi1>, vector<1x256xf32>
    %c0_10 = arith.constant 0 : index
    %c0_11 = arith.constant 0 : index
    %c0_12 = arith.constant 0 : index
    %31 = vector.load %arg4[%c0_10, %c0_11, %c0_12] : memref<1x1x256xf32, #tpu.memory_space<vmem>>, vector<1x1x256xf32>
    %32 = vector.shape_cast %31 : vector<1x1x256xf32> to vector<1x256xf32>
    %33 = vector.shape_cast %30 : vector<1x256xf32> to vector<1x1x256xf32>
    tpu.vector_store %arg4[%c0_10, %c0_11, %c0_12], %33 {strides = array<i32>} : memref<1x1x256xf32, #tpu.memory_space<vmem>>, vector<1x1x256xf32>,
    %cst_13 = arith.constant 0.356674939 : f32
    %34 = vector.broadcast %cst_13 : f32 to vector<1x256xf32>
    %35 = arith.cmpf ogt, %19, %34 : vector<1x256xf32>
    %36 = arith.andi %28, %35 : vector<1x256xi1>
    %37 = arith.extui %28 : vector<1x256xi1> to vector<1x256xi32>
    %38 = arith.sitofp %37 : vector<1x256xi32> to vector<1x256xf32>
    %39 = vector.shape_cast %38 : vector<1x256xf32> to vector<1x1x256xf32>
    %cst_14 = arith.constant dense<0.000000e+00> : vector<1xf32>
    %40 = vector.multi_reduction <add>, %39, %cst_14 [1, 2] : vector<1x1x256xf32> to vector<1xf32>
    %41 = vector.shape_cast %40 : vector<1xf32> to vector<1x1x1xf32>
    %42 = vector.extract %41[0, 0, 0] : f32 from vector<1x1x1xf32>
    %43 = vector.broadcast %42 : f32 to vector<1x1xf32>
    %44 = arith.extui %36 : vector<1x256xi1> to vector<1x256xi32>
    %45 = arith.sitofp %44 : vector<1x256xi32> to vector<1x256xf32>
    %46 = vector.shape_cast %45 : vector<1x256xf32> to vector<1x1x256xf32>
    %cst_15 = arith.constant dense<0.000000e+00> : vector<1xf32>
    %47 = vector.multi_reduction <add>, %46, %cst_15 [1, 2] : vector<1x1x256xf32> to vector<1xf32>
    %48 = vector.shape_cast %47 : vector<1xf32> to vector<1x1x1xf32>
    %49 = vector.extract %48[0, 0, 0] : f32 from vector<1x1x1xf32>
    %50 = vector.broadcast %49 : f32 to vector<1x1xf32>
    %cst_16 = arith.constant 0.000000e+00 : f32
    %51 = vector.broadcast %cst_16 : f32 to vector<1x256xf32>
    %52 = arith.select %36, %19, %51 : vector<1x256xi1>, vector<1x256xf32>
    %53 = vector.shape_cast %52 : vector<1x256xf32> to vector<1x1x256xf32>
    %cst_17 = arith.constant dense<0.000000e+00> : vector<1xf32>
    %54 = vector.multi_reduction <add>, %53, %cst_17 [1, 2] : vector<1x1x256xf32> to vector<1xf32>
    %55 = vector.shape_cast %54 : vector<1xf32> to vector<1x1x1xf32>
    %56 = vector.extract %55[0, 0, 0] : f32 from vector<1x1x1xf32>
    %57 = vector.broadcast %56 : f32 to vector<1x1xf32>
    %58 = tpu.iota {dimensions = array<i32: 1>} : vector<1x128xi32>
    %c0_i32 = arith.constant 0 : i32
    %59 = vector.broadcast %c0_i32 : i32 to vector<1x128xi32>
    %60 = arith.cmpi eq, %58, %59 : vector<1x128xi32>
    %c1_i32 = arith.constant 1 : i32
    %61 = vector.broadcast %c1_i32 : i32 to vector<1x128xi32>
    %62 = arith.cmpi eq, %58, %61 : vector<1x128xi32>
    %c2_i32 = arith.constant 2 : i32
    %63 = vector.broadcast %c2_i32 : i32 to vector<1x128xi32>
    %64 = arith.cmpi eq, %58, %63 : vector<1x128xi32>
    %cst_18 = arith.constant 0.000000e+00 : f32
    %65 = vector.shape_cast %57 : vector<1x1xf32> to vector<1x1xf32>
    %66 = vector.broadcast %65 : vector<1x1xf32> to vector<1x128xf32>
    %67 = vector.broadcast %cst_18 : f32 to vector<1x128xf32>
    %68 = arith.select %64, %66, %67 : vector<1x128xi1>, vector<1x128xf32>
    %69 = vector.shape_cast %50 : vector<1x1xf32> to vector<1x1xf32>
    %70 = vector.broadcast %69 : vector<1x1xf32> to vector<1x128xf32>
    %71 = arith.select %62, %70, %68 : vector<1x128xi1>, vector<1x128xf32>
    %72 = vector.shape_cast %43 : vector<1x1xf32> to vector<1x1xf32>
    %73 = vector.broadcast %72 : vector<1x1xf32> to vector<1x128xf32>
    %74 = arith.select %60, %73, %71 : vector<1x128xi1>, vector<1x128xf32>
    %c0_19 = arith.constant 0 : index
    %c0_20 = arith.constant 0 : index
    %c0_21 = arith.constant 0 : index
    %75 = vector.load %arg5[%c0_19, %c0_20, %c0_21] : memref<1x1x128xf32, #tpu.memory_space<vmem>>, vector<1x1x128xf32>
    %76 = vector.shape_cast %75 : vector<1x1x128xf32> to vector<1x128xf32>
    %77 = vector.shape_cast %74 : vector<1x128xf32> to vector<1x1x128xf32>
    tpu.vector_store %arg5[%c0_19, %c0_20, %c0_21], %77 {strides = array<i32>} : memref<1x1x128xf32, #tpu.memory_space<vmem>>, vector<1x1x128xf32>,
    return
  }
  func.func @transform_0(%arg0: i32, %arg1: i32) -> (i32, i32, i32) {
    %c0_i32 = arith.constant 0 : i32
    %c0_i32_0 = arith.constant 0 : i32
    return %arg0, %c0_i32, %arg1 : i32, i32, i32
  }
  func.func @transform_1(%arg0: i32, %arg1: i32) -> (i32, i32, i32) {
    %c0_i32 = arith.constant 0 : i32
    %c0_i32_0 = arith.constant 0 : i32
    return %arg0, %c0_i32, %arg1 : i32, i32, i32
  }
  func.func @transform_2(%arg0: i32, %arg1: i32) -> (i32, i32, i32) {
    %c0_i32 = arith.constant 0 : i32
    %c0_i32_0 = arith.constant 0 : i32
    return %arg0, %c0_i32, %arg1 : i32, i32, i32
  }
  func.func @transform_3(%arg0: i32, %arg1: i32) -> (i32, i32, i32) {
    %c0_i32 = arith.constant 0 : i32
    %c0_i32_0 = arith.constant 0 : i32
    return %arg0, %c0_i32, %arg1 : i32, i32, i32
  }
}

</mosaic_0001>

<bundles_post_ra>
// kernel: ohem_ce_loss.1
= control target key start
LH: loop header
LB: loop body
LE: loop exit
PB: predicated region body
PF: predicated region fallthrough
CT: control target
= control target key end

     0   :  { %s682_s12 = smov 0   ;;  %s684_s13 = smov 0   ;;  %s774_s0 = inlined_call_operand.vmem [shape: f32[2,4,256], index: 0, kind: input, shape index: {}]   ;;  %s775_s1 = inlined_call_operand.vmem [shape: s32[2,1,256], index: 1, kind: input, shape index: {}]   ;;  %s776_s2 = inlined_call_operand.vmem [shape: f32[2,1,256], index: 2, kind: output, shape index: {0}]   ;;  %s777_s3 = inlined_call_operand.vmem [shape: f32[2,1,128], index: 3, kind: output, shape index: {1}]  }
   0x1   :  { %s686_s14 = smov 0  }
   0x2 LB: > { %s26_s15 = sadd.s32 1, %s653_s13  ;;  %p583_p0 = scmp.ge.s32.totalorder %s657_s14, 1  ;;  %s657_s14 = sphi %s686_s14, %s14_s14   ;;  %s653_s13 = sphi %s684_s13, %s779_s13   ;;  %s649_s12 = sphi %s682_s12, %s778_s12  }
   0x3   : > { %p28_p1 = scmp.ge.s32.totalorder %s26_s15, 2  ;;  %p179_p2 = scmp.lt.s32.totalorder %s657_s14, 3 }
   0x5   : > { %s781_s15 = smov (%p28_p1, %s26_s15), 0  ;;  %p180_p3 = pnand %p583_p0, %p179_p2 }
   0x6   : > { %p225_p4 = scmp.lt.s32.totalorder (!%p180_p3), %s649_s12, 1 }
   0x7   : > { %183 = sbr.rel (%p180_p3) target bundleno = 297 (0x129), region = 28 }
   0xc   : > { %v302_v0 = vlaneseq  ;;  %s783_s12 = smov (!%p225_p4, %s649_s12), 1  ;;  %vm263_vm0 = vcmask 1043456   ;;  %v659_v6 = vmov 0   ;;  %vm395_vm2 = vcmask 1040384  }
   0xd   : > { %s586_s16 = sshll.u32 %s783_s12, 1  ;;  %s594_s17 = sshll.u32 %s783_s12, 3  ;;  %v660_v16 = vmov 0.0  }
   0xe   : > { %v703_v1 = vshrl.u32 %v302_v0, 7  ;;  %s241_s20 = scalar_lea.vmem %s775_s1, %s586_s16  ;;  %s232_s23 = scalar_lea.vmem %s774_s0, %s594_s17  ;;  %vm384_vm11 = vcmp.lt.s32.totalorder %v302_v0, 256 }
   0xf   : > { %v259_v2 = vld [vmem:[%s241_s20] sm:$0x3]  ;;  %s250_s26 = scalar_lea.vmem %s776_s2, %s586_s16  ;;  %s257_s5 = scalar_lea.vmem %s777_s3, %s783_s12 }
  0x10   : > { %v306_v3 = vsub.s32 0, %v703_v1  ;;  %v310_v4 = vsub.s32 1, %v703_v1  ;;  %vm348_vm1 = vcmp.ne.s32.totalorder %v259_v2, 255  ;;  %v258_v5 = vld [vmem:[%s232_s23] sm:$0xff] }
  0x11   : > { %v349_v7 = vsel %vm348_vm1, 1, %v659_v6  ;;  %v261_v8 = vcombine.high %v258_v5, %v258_v5  ;;  %v264_v9 = vsel %vm263_vm0, %v258_v5, -inf }
  0x12   : > { %v718_v10 = vrot.slane %v349_v7, %v306_v3  ;;  %v720_v11 = vrot.slane %v349_v7, %v310_v4  ;;  %v265_v12 = vrot.slane %v264_v9, 4  ;;  %v307_v34 = vrot.slane %v259_v2, %v306_v3 }
  0x13   : > { %v271_v13 = vsel %vm263_vm0, %v261_v8, -inf  ;;  %v311_v35 = vrot.slane %v259_v2, %v310_v4 }
  0x14   : > { %vm358_vm3 = vcmp.ne.s32.totalorder %v718_v10, 0  ;;  %vm359_vm4 = vcmp.ne.s32.totalorder %v720_v11, 0  ;;  %v266_v14 = vmax.f32 %v264_v9, %v265_v12  ;;  %v272_v15 = vrot.slane %v271_v13, 4 }
  0x15   : > { %v588_v17 = vsel %vm358_vm3, 1.0, %v660_v16  ;;  %v589_v18 = vsel %vm359_vm4, 1.0, %v660_v16  ;;  %vm312_vm5 = vcmp.eq.s32.totalorder %v703_v1, %v307_v34  ;;  %vm313_vm6 = vcmp.eq.s32.totalorder %v703_v1, %v311_v35 }
  0x16   : > { %v396_v19 = vsel %vm395_vm2, %v588_v17, 0.0  ;;  %v397_v20 = vsel %vm395_vm2, %v589_v18, 0.0  ;;  %v267_v21 = vrot.slane %v266_v14, 2  ;;  %v273_v22 = vmax.f32 %v271_v13, %v272_v15 }
  0x17   : > { %v398_v23 = vadd.f32 %v397_v20, %v396_v19 }
  0x18   : > { %v268_v24 = vmax.f32 %v266_v14, %v267_v21  ;;  %v274_v25 = vrot.slane %v273_v22, 2 }
  0x19   : > { %399 = vadd.xlane.f32.xlu0 %v398_v23 }
  0x1a   : > { %v269_v26 = vrot.slane %v268_v24, 1  ;;  %v275_v27 = vmax.f32 %v273_v22, %v274_v25 }
  0x1c   : > { %v270_v28 = vmax.f32 %v268_v24, %v269_v26  ;;  %v276_v29 = vrot.slane %v275_v27, 1 }
  0x1e   : > { %v277_v30 = vmax.f32 %v275_v27, %v276_v29 }
  0x20   : > { %v280_v31 = vcombine.low %v270_v28, %v277_v30 }
  0x22   : > { %v282_v32 = vsub.f32 %v258_v5, %v280_v31  ;;  %v661_v5 = vmov 1966171168  }
  0x23   : > { %v368_v6 = vunpack.c.l.s4 %v661_v5 }
  0x24   : > { %v283_v33 = vmul.f32 1.442695, %v282_v32  ;;  %v315_v36 = vcombine.high %v282_v32, %v282_v32  ;;  %v317_v38 = vsel %vm312_vm5, %v282_v32, 0.0 }
  0x25   : > { %v319_v44 = vsel %vm263_vm0, %v317_v38, 0.0  ;;  %v369_v14 = vunpack.c.0.s8 %v368_v6 }
  0x26   : > { %629 = vpow2.f32 %v283_v33  ;;  %v318_v42 = vsel %vm313_vm6, %v315_v36, 0.0  ;;  %v320_v50 = vrot.slane %v319_v44, 4 }
  0x27   : > { %v326_v47 = vsel %vm263_vm0, %v318_v42, 0.0  ;;  %v372_v20 = vsub.s32 %v369_v14, %v703_v1 }
  0x28   : > { %v327_v53 = vrot.slane %v326_v47, 4  ;;  %v321_v56 = vadd.f32 %v320_v50, %v319_v44 }
  0x2a   : > { %v328_v59 = vadd.f32 %v327_v53, %v326_v47  ;;  %v322_v61 = vrot.slane %v321_v56, 2 }
  0x2c   : > { %v329_v62 = vrot.slane %v328_v59, 2  ;;  %v323_v63 = vadd.f32 %v322_v61, %v321_v56 }
  0x2e   : > { %v330_v2 = vadd.f32 %v329_v62, %v328_v59  ;;  %v324_v3 = vrot.slane %v323_v63, 1 }
  0x30   : > { %v331_v4 = vrot.slane %v330_v2, 1  ;;  %v325_v7 = vadd.f32 %v324_v3, %v323_v63 }
  0x32   : > { %v332_v9 = vadd.f32 %v331_v4, %v330_v2 }
  0x33   : > { %v630_v37 = vpop.eup %629 }
  0x34   : > { %v286_v39 = vcombine.high %v630_v37, %v630_v37  ;;  %v288_v40 = vsel %vm263_vm0, %v630_v37, 0.0 }
  0x35   : > { %v289_v41 = vrot.slane %v288_v40, 4 }
  0x36   : > { %v295_v43 = vsel %vm263_vm0, %v286_v39, 0.0 }
  0x37   : > { %v290_v45 = vadd.f32 %v289_v41, %v288_v40  ;;  %v296_v46 = vrot.slane %v295_v43, 4 }
  0x39   : > { %v291_v48 = vrot.slane %v290_v45, 2  ;;  %v297_v49 = vadd.f32 %v296_v46, %v295_v43 }
  0x3b   : > { %v292_v51 = vadd.f32 %v291_v48, %v290_v45  ;;  %v298_v52 = vrot.slane %v297_v49, 2 }
  0x3d   : > { %v293_v54 = vrot.slane %v292_v51, 1  ;;  %v299_v55 = vadd.f32 %v298_v52, %v297_v49  ;;  %v340_v52 = vand.u32 127, %v302_v0 }
  0x3f   : > { %v294_v57 = vadd.f32 %v293_v54, %v292_v51  ;;  %v300_v58 = vrot.slane %v299_v55, 1  ;;  %vm440_vm12 = vcmp.eq.s32.totalorder %v340_v52, 2  ;;  %vm439_vm13 = vcmp.eq.s32.totalorder %v340_v52, 1 }
  0x40   : > { %vm438_vm14 = vcmp.eq.s32.totalorder %v340_v52, 0 }
  0x41   : > { %v301_v60 = vadd.f32 %v300_v58, %v299_v55  ;;  %631 = vlog2.f32 %v294_v57 }
  0x43   : > { %633 = vlog2.f32 %v301_v60 }
  0x4e   : > { %v632_v8 = vpop.eup %631 }
  0x4f   : > { %v334_v12 = vmul.f32 0.6931472, %v632_v8 }
  0x50   : > { %v634_v13 = vpop.eup %633 }
  0x51   : > { %v336_v15 = vmul.f32 0.6931472, %v634_v13  ;;  %v337_v17 = vsub.f32 %v334_v12, %v325_v7 }
  0x53   : > { %v338_v18 = vsub.f32 %v336_v15, %v332_v9  ;;  %v362_v19 = vsel %vm358_vm3, %v337_v17, 0.0  ;;  %vm387_vm7 = vcmp.gt.f32.partialorder %v337_v17, 0.35667494 }
  0x54   : > { %vm389_vm8 = vmand %vm358_vm3, %vm387_vm7 }
  0x55   : > { %v363_v21 = vsel %vm359_vm4, %v338_v18, 0.0  ;;  %vm388_vm9 = vcmp.gt.f32.partialorder %v338_v18, 0.35667494  ;;  %v424_v22 = vsel %vm389_vm8, %v337_v17, 0.0  ;;  %v590_v23 = vsel %vm389_vm8, 1.0, %v660_v16 }
  0x56   : > { %v366_v24 = vcombine.low %v362_v19, %v363_v21  ;;  %vm390_vm10 = vmand %vm359_vm4, %vm388_vm9  ;;  %v426_v25 = vsel %vm395_vm2, %v424_v22, 0.0  ;;  %v412_v26 = vsel %vm395_vm2, %v590_v23, 0.0 }
  0x57   : > { %v425_v27 = vsel %vm390_vm10, %v338_v18, 0.0  ;;  %v591_v1 = vsel %vm390_vm10, 1.0, %v660_v16 }
  0x58   : > { %v373_v10 = vrot.slane %v366_v24, %v372_v20  ;;  %v427_v28 = vsel %vm395_vm2, %v425_v27, 0.0  ;;  %v413_v29 = vsel %vm395_vm2, %v591_v1, 0.0 }
  0x59   : > { %v428_v11 = vadd.f32 %v427_v28, %v426_v25  ;;  %v414_v30 = vadd.f32 %v413_v29, %v412_v26 }
  0x5a   : > { %v380_v31 = vrot.slane %v373_v10, %v372_v20 }
  0x5b   : > { %429 = vadd.xlane.f32.xlu1 %v428_v11  ;;  %415 = vadd.xlane.f32.xlu0 %v414_v30 }
  0x5c   : > { %386 = vst.msk [vmem:[%s250_s26] sm:$0x3] %vm384_vm11, %v380_v31 }
  0xa2   : > { %v400_v32 = vpop.xlane.xlu0 %399 }
  0xa3   : > { %v401_v16 = vrot.slane %v400_v32, 4 }
  0xa5   : > { %v402_v33 = vadd.f32 %v401_v16, %v400_v32 }
  0xa7   : > { %v403_v34 = vrot.slane %v402_v33, 2 }
  0xa9   : > { %v404_v35 = vadd.f32 %v403_v34, %v402_v33 }
  0xab   : > { %v405_v36 = vrot.slane %v404_v35, 1 }
  0xad   : > { %v406_v37 = vadd.f32 %v405_v36, %v404_v35 }
  0xaf   : > { %595 = vpush %v406_v37 }
  0xe0   : > { %s596_s27 = spop %595 }
  0xe1   : > { %v445_v56 = vstv %s596_s27 }
  0xe4   : > { %v430_v38 = vpop.xlane.xlu1 %429  ;;  %v416_v39 = vpop.xlane.xlu0 %415 }
  0xe5   : > { %v431_v40 = vrot.slane %v430_v38, 4  ;;  %v417_v41 = vrot.slane %v416_v39, 4 }
  0xe7   : > { %v432_v42 = vadd.f32 %v431_v40, %v430_v38  ;;  %v418_v43 = vadd.f32 %v417_v41, %v416_v39 }
  0xe9   : > { %v433_v44 = vrot.slane %v432_v42, 2  ;;  %v419_v45 = vrot.slane %v418_v43, 2 }
  0xeb   : > { %v434_v46 = vadd.f32 %v433_v44, %v432_v42  ;;  %v420_v47 = vadd.f32 %v419_v45, %v418_v43 }
  0xed   : > { %v421_v48 = vrot.slane %v420_v47, 1  ;;  %v435_v49 = vrot.slane %v434_v46, 1 }
  0xef   : > { %v422_v50 = vadd.f32 %v421_v48, %v420_v47  ;;  %v436_v51 = vadd.f32 %v435_v49, %v434_v46 }
  0xf1   : > { %597 = vpush %v422_v50 }
  0xf2   : > { %599 = vpush %v436_v51 }
 0x122   : > { %s598_s28 = spop %597 }
 0x123   : > { %v443_v53 = vstv %s598_s28  ;;  %s600_s29 = spop %599 }
 0x124   : > { %v441_v54 = vstv %s600_s29 }
 0x125   : > { %v442_v55 = vsel %vm440_vm12, %v441_v54, 0.0 }
 0x126   : > { %v444_v57 = vsel %vm439_vm13, %v443_v53, %v442_v55 }
 0x127   : > { %v446_v58 = vsel %vm438_vm14, %v445_v56, %v444_v57 }
 0x128   : > { %447 = vst [vmem:[%s257_s5] sm:$0x1] %v446_v58 }
 0x129 PF: > { %s14_s14 = sadd.s32 1, %s657_s14   ;;  %s778_s12 = smov %s653_s13 }
 0x12a   : > { %p11_p5 = scmp.ge.s32.totalorder %s14_s14, 4   ;;  %s779_s13 = smov %s781_s15 }
 0x12c   :  { %13 = sbr.rel (!%p11_p5) target bundleno = 2 (0x2), region = 73 }

</bundles_post_ra>
